<compile_context>
chip_gen: v6e
topology: v6e:2x2x1
jax: 0.10.0
libtpu: 0.0.40
codegen_flags: <defaults>
</compile_context>

<pallas_src>
import jax
import jax.numpy as jnp
from jax.experimental import pallas as pl
from jax.experimental.pallas import tpu as pltpu

# ------------------------- problem configuration -------------------------
HIDDEN_DIM = 32
K_NEIGHBORS = 4          # fixed in-degree per relation
LANES = 128

FEAT_DICT = {
    ("user", "writes", "review"): (16, 16, 0),
    ("item", "about", "review"): (8, 16, 0),
}
NODE_FEATS = {"user": 16, "item": 8, "review": 16}
NUM_NODES = {"user": 12, "item": 10, "review": 16}
REL_WRITES = ("user", "writes", "review")
REL_ABOUT = ("item", "about", "review")

DH_W = FEAT_DICT[REL_WRITES][0]      # 16 : writes-LSTM hidden size (= user feat dim)
DH_A = FEAT_DICT[REL_ABOUT][0]       # 8  : about-LSTM hidden size  (= item feat dim)
DH = DH_W + DH_A                     # 24 : fused (block-diagonal) LSTM hidden size
D_DST = FEAT_DICT[REL_WRITES][1]     # 16 : review (dst) feat dim
N_USER = NUM_NODES["user"]
N_ITEM = NUM_NODES["item"]
N_SRC = N_USER + N_ITEM              # 22 : stacked source rows

# fused gate order (i, f, o, g) -> the 3 sigmoid gates are lane-contiguous
GATE_PERM = (0, 1, 3, 2)             # fused slot -> PyTorch chunk index (i,f,g,o)

# ---- mega parameter-slab row layout (176, 128) ----
R_IH = 0                      # rows [0:24)   fused W_ih   (user dims 0:16, item dims 16:24)
R_HH = 24                     # rows [24:48)  fused W_hh   (writes h 0:16, about h 16:24)
R_LSTM_B = 48                 # row 48        fused b_ih + b_hh
R_SELF = 56                   # rows [56:72)  fused W_self  (writes lanes 0:32, about 32:64)
R_NEIGH = 72                  # rows [72:96)  fused W_neigh (writes rows 0:16, about 16:24)
R_SAGE_B = 96                 # row 96        fused SAGE bias (lanes 0:64)
R_HEAD = 104                  # rows [104:112) ln_g, ln_b, bn_g, bn_b, bn_m, bn_v, b1, b2(pad)
R_W1 = 112                    # rows [112:144) Linear(H,H) weight
R_W2 = 144                    # rows [144:176) Linear(H,2) weight, zero-padded to 128 lanes
P_ROWS = 176

# TODO(synk): DGL's lstm reducer degree-buckets variable in-degree nodes; here every dst node
#             has a fixed in-degree K and every relation reaches every dst node, so a single
#             fixed-length fused LSTM sweep + unconditional sum over relations is exact.


# ------------------------- in-kernel math helpers -------------------------
def _gelu(x):
    # tanh-approx GELU (== torch.nn.GELU(approximate='tanh')); tanh lands on the EUP slot.
    # TODO(synk): torch.nn.GELU() default is exact erf; expect ~1e-3 deviation.
    return 0.5 * x * (1.0 + jnp.tanh(0.7978845608028654 * (x + 0.044715 * x * x * x)))


# ------------------------- fused Pallas kernel -------------------------
def _fused_kernel(h_src_ref, h_rev_ref, nbr_ref, p_ref, out_ref):
    f32 = jnp.float32
    n_dst = h_rev_ref.shape[0]
    n_src = h_src_ref.shape[0]
    H2 = 2 * HIDDEN_DIM

    # ---- packed parameter views (static, mostly 8-aligned row slices) ----
    w_ih = p_ref[R_IH:R_IH + DH, :]                       # (24, 128)
    w_hh = p_ref[R_HH:R_HH + DH, :]                       # (24, 128)
    b_lstm = p_ref[R_LSTM_B:R_LSTM_B + 1, :]              # (1, 128)
    w_self = p_ref[R_SELF:R_SELF + D_DST, 0:H2]           # (16, 64)
    w_neigh = p_ref[R_NEIGH:R_NEIGH + DH, 0:H2]           # (24, 64)
    b_sage = p_ref[R_SAGE_B:R_SAGE_B + 1, 0:H2]           # (1, 64)
    head = p_ref[R_HEAD:R_HEAD + 8, 0:HIDDEN_DIM]         # (8, 32)
    b2_pad = p_ref[R_HEAD + 7:R_HEAD + 8, :]              # (1, 128), lanes >=2 are zero
    w1 = p_ref[R_W1:R_W1 + HIDDEN_DIM, 0:HIDDEN_DIM]      # (32, 32)
    w2_pad = p_ref[R_W2:R_W2 + HIDDEN_DIM, :]             # (32, 128), lanes >=2 are zero

    # ---- input->gate transform for every (stacked) source node: one MXU push, hoisted ----
    x_gates = jnp.dot(h_src_ref[...], w_ih, preferred_element_type=f32)    # (22, 128)

    # ---- hoisted neighbor gather: "two-hot" rows pick the writes AND about neighbor ----
    # row r = t*n_dst + d of oh_all selects src rows nbr_w[d,t] (user block) and
    # N_USER + nbr_a[d,t] (item block); their x_gates rows are disjoint in lanes, so the
    # matmul directly yields the fused per-step gate input for both relations.
    nbr = nbr_ref[...]                                                     # (16, 8) int32
    lane_ids = jax.lax.broadcasted_iota(jnp.int32, (n_dst, n_src), 1)
    oh_blocks = []
    for t in range(K_NEIGHBORS):
        eq_w = (lane_ids == nbr[:, t:t + 1]).astype(f32)
        eq_a = (lane_ids == nbr[:, K_NEIGHBORS + t:K_NEIGHBORS + t + 1]).astype(f32)
        oh_blocks.append(eq_w + eq_a)                                      # disjoint -> OR
    oh_all = jnp.concatenate(oh_blocks, axis=0)                            # (K*n_dst, 22)
    x_seq = jnp.dot(oh_all, x_gates, preferred_element_type=f32) + b_lstm  # (K*n_dst, 128)

    # ---- fused (both relations) LSTM recurrence; w_hh is the only in-loop MXU RHS ----
    h = jnp.zeros((n_dst, DH), f32)
    c = jnp.zeros((n_dst, DH), f32)
    for t in range(K_NEIGHBORS):                                           # static, unrolled
        g_pre = x_seq[t * n_dst:(t + 1) * n_dst, :]                        # (16, 128)
        if t > 0:                                                          # h == 0 at t == 0
            g_pre = g_pre + jnp.dot(h, w_hh, preferred_element_type=f32)
        sig = jax.nn.sigmoid(g_pre[:, 0:3 * DH])                           # i, f, o together
        i_g = sig[:, 0:DH]
        f_g = sig[:, DH:2 * DH]
        o_g = sig[:, 2 * DH:3 * DH]
        g_g = jnp.tanh(g_pre[:, 3 * DH:4 * DH])
        c = f_g * c + i_g * g_g
        h = o_g * jnp.tanh(c)

    # ---- SAGEConv projections for BOTH relations in one pair of matmuls ----
    rst = (jnp.dot(h_rev_ref[...], w_self, preferred_element_type=f32)
           + jnp.dot(h, w_neigh, preferred_element_type=f32) + b_sage)     # (16, 64)
    rst = _gelu(rst)                                                       # SAGEConv activation
    x = rst[:, 0:HIDDEN_DIM] + rst[:, HIDDEN_DIM:H2]                       # HeteroGraphConv 'sum'

    # ---- LayerNorm(hidden_dim), eps=1e-5, biased variance ----
    ln_g = head[0:1, :]
    ln_b = head[1:2, :]
    bn_g = head[2:3, :]
    bn_b = head[3:4, :]
    bn_m = head[4:5, :]
    bn_v = head[5:6, :]
    b1 = head[6:7, :]
    mu = jnp.mean(x, axis=-1, keepdims=True)
    xc = x - mu
    var = jnp.mean(xc * xc, axis=-1, keepdims=True)
    x = xc * jax.lax.rsqrt(var + 1e-5) * ln_g + ln_b
    # Dropout (eval) = identity; BatchNorm1d (eval, running stats), eps=1e-5
    x = (x - bn_m) * jax.lax.rsqrt(bn_v + 1e-5) * bn_g + bn_b
    # Linear(H, H) + GELU + Linear(H, 2) (output zero-padded to 128 lanes -> unmasked store)
    x = _gelu(jnp.dot(x, w1, preferred_element_type=f32) + b1)
    out_ref[...] = jnp.dot(x, w2_pad, preferred_element_type=f32) + b2_pad


# ------------------------- pallas_call wrapper -------------------------
def hetero_graphsage_forward(packed, h_dict, nbr_dict):
    n = h_dict["review"].shape[0]
    # Block-diagonal source-feature stack: user rows [0:12) lanes [0:16), item rows [12:22)
    # lanes [16:24).  Pure layout plumbing so the kernel needs one x-transform + one gather.
    h_src = jnp.concatenate(
        [jnp.pad(h_dict["user"], ((0, 0), (0, DH_A))),
         jnp.pad(h_dict["item"], ((0, 0), (DH_W, 0)))], axis=0)            # (22, 24)
    # Combined neighbor ids; 'about' ids are offset into the item block of the stacked source.
    nbr = jnp.concatenate(
        [nbr_dict[REL_WRITES],
         nbr_dict[REL_ABOUT] + jnp.int32(N_USER)], axis=1).astype(jnp.int32)  # (16, 8)

    vmem = pl.BlockSpec(memory_space=pltpu.MemorySpace.VMEM)
    out = pl.pallas_call(
        _fused_kernel,
        out_shape=jax.ShapeDtypeStruct((n, LANES), jnp.float32),
        in_specs=[vmem] * 4,
        out_specs=vmem,
    )(h_src, h_dict["review"], nbr, packed)
    # TODO(synk): at larger N_review / multi-graph batches, add a "parallel" grid axis over
    #             dst-node tiles (v7x has 2 TensorCores); pure overhead at 16 nodes.
    return out[:, :2]


# ------------------------- one-time parameter packing -------------------------
def _place_gates(slab, m, row0, lane0, dh):
    """Place (rows, 4*dh) gate-packed [i,f,g,o] PyTorch-order weights into the fused slab:
    fused gate slot s lives at lanes [s*DH + lane0, s*DH + lane0 + dh)."""
    rows = m.shape[0]
    for s, pg in enumerate(GATE_PERM):
        slab = slab.at[row0:row0 + rows,
                       s * DH + lane0:s * DH + lane0 + dh].set(m[:, pg * dh:(pg + 1) * dh])
    return slab


def pack_params(params):
    """One-time prep (outside the jitted forward): ONE lane-padded (176, 128) parameter slab."""
    slab = jnp.zeros((P_ROWS, LANES), jnp.float32)
    pw = params["conv"][REL_WRITES]
    pa = params["conv"][REL_ABOUT]

    # fused LSTM: W_ih, W_hh, bias  (b_lstm must equal b_ih + b_hh when porting torch weights)
    slab = _place_gates(slab, pw["w_ih"], R_IH, 0, DH_W)
    slab = _place_gates(slab, pa["w_ih"], R_IH + DH_W, DH_W, DH_A)
    slab = _place_gates(slab, pw["w_hh"], R_HH, 0, DH_W)
    slab = _place_gates(slab, pa["w_hh"], R_HH + DH_W, DH_W, DH_A)
    slab = _place_gates(slab, pw["b_lstm"], R_LSTM_B, 0, DH_W)
    slab = _place_gates(slab, pa["b_lstm"], R_LSTM_B, DH_W, DH_A)

    # fused SAGE projections: writes -> output lanes [0:32), about -> [32:64)
    slab = slab.at[R_SELF:R_SELF + D_DST, 0:HIDDEN_DIM].set(pw["w_self"])
    slab = slab.at[R_SELF:R_SELF + D_DST, HIDDEN_DIM:2 * HIDDEN_DIM].set(pa["w_self"])
    slab = slab.at[R_NEIGH:R_NEIGH + DH_W, 0:HIDDEN_DIM].set(pw["w_neigh"])
    slab = slab.at[R_NEIGH + DH_W:R_NEIGH + DH, HIDDEN_DIM:2 * HIDDEN_DIM].set(pa["w_neigh"])
    slab = slab.at[R_SAGE_B, 0:HIDDEN_DIM].set(pw["bias"][0])
    slab = slab.at[R_SAGE_B, HIDDEN_DIM:2 * HIDDEN_DIM].set(pa["bias"][0])

    # head: ln_g, ln_b, bn_g, bn_b, bn_mean, bn_var, b1, b2(pad) + w1 + w2(pad to 128 lanes)
    hp = params["head"]
    head = jnp.concatenate([hp["ln_gamma"], hp["ln_beta"], hp["bn_gamma"], hp["bn_beta"],
                            hp["bn_mean"], hp["bn_var"], hp["b1"],
                            jnp.zeros((1, HIDDEN_DIM), jnp.float32)], axis=0)   # (8, 32)
    slab = slab.at[R_HEAD:R_HEAD + 8, 0:HIDDEN_DIM].set(head)
    slab = slab.at[R_HEAD + 7, 0:2].set(hp["b2"][0])
    slab = slab.at[R_W1:R_W1 + HIDDEN_DIM, 0:HIDDEN_DIM].set(hp["w1"])
    slab = slab.at[R_W2:R_W2 + HIDDEN_DIM, 0:2].set(hp["w2"])
    return slab


# ------------------------- deterministic parameter init -------------------------
def _init_params(key):
    params = {"conv": {}}
    for rel, (d_src, d_dst, _) in FEAT_DICT.items():
        key, k0, k1, k2, k3, k4 = jax.random.split(key, 6)
        params["conv"][rel] = {
            # weights stored [in, out]; gate order [i, f, g, o] (PyTorch nn.LSTM convention)
            "w_ih": 0.2 * jax.random.normal(k0, (d_src, 4 * d_src), jnp.float32),
            "w_hh": 0.2 * jax.random.normal(k1, (d_src, 4 * d_src), jnp.float32),
            # NOTE: when porting real PyTorch weights, b_lstm must equal b_ih + b_hh.
            "b_lstm": 0.1 * jax.random.normal(k2, (1, 4 * d_src), jnp.float32),
            "w_self": 0.2 * jax.random.normal(k3, (d_dst, HIDDEN_DIM), jnp.float32),
            "w_neigh": 0.2 * jax.random.normal(k4, (d_src, HIDDEN_DIM), jnp.float32),
            "bias": jnp.zeros((1, HIDDEN_DIM), jnp.float32),   # SAGEConv bias (default zeros)
        }
    key, k1, k2, k3, k4 = jax.random.split(key, 5)
    params["head"] = {
        "ln_gamma": jnp.ones((1, HIDDEN_DIM), jnp.float32),
        "ln_beta": jnp.zeros((1, HIDDEN_DIM), jnp.float32),
        "bn_gamma": jnp.ones((1, HIDDEN_DIM), jnp.float32),
        "bn_beta": jnp.zeros((1, HIDDEN_DIM), jnp.float32),
        "bn_mean": jnp.zeros((1, HIDDEN_DIM), jnp.float32),
        "bn_var": jnp.ones((1, HIDDEN_DIM), jnp.float32),
        "w1": 0.2 * jax.random.normal(k1, (HIDDEN_DIM, HIDDEN_DIM), jnp.float32),
        "b1": 0.1 * jax.random.normal(k2, (1, HIDDEN_DIM), jnp.float32),
        "w2": 0.2 * jax.random.normal(k3, (HIDDEN_DIM, 2), jnp.float32),
        "b2": 0.1 * jax.random.normal(k4, (1, 2), jnp.float32),
    }
    return params


# ------------------------- driver -------------------------
if __name__ == "__main__":
    root = jax.random.PRNGKey(0)
    kp, kf, kg = jax.random.split(root, 3)

    params = _init_params(kp)
    packed = pack_params(params)          # one-time prep (outside the jitted forward)

    # node features per type
    h_dict = {}
    for i, (ntype, n) in enumerate(NUM_NODES.items()):
        h_dict[ntype] = jax.random.normal(jax.random.fold_in(kf, i),
                                          (n, NODE_FEATS[ntype]), jnp.float32)

    # synthetic bipartite block: per relation, K neighbor src-node ids per dst ('review') node
    nbr_dict = {}
    for i, rel in enumerate(FEAT_DICT):
        src, _, dst = rel
        nbr_dict[rel] = jax.random.randint(jax.random.fold_in(kg, i),
                                           (NUM_NODES[dst], K_NEIGHBORS),
                                           0, NUM_NODES[src], dtype=jnp.int32)

    fwd = jax.jit(hetero_graphsage_forward)
    logits = jax.block_until_ready(fwd(packed, h_dict, nbr_dict))

    assert logits.shape == (NUM_NODES["review"], 2)
    assert bool(jnp.all(jnp.isfinite(logits)))
    print("KERNEL_OK")
</pallas_src>

<mosaic_0001>
module attributes {stable_mosaic.version = 11 : i64} {
  func.func @_fused_kernel(%arg0: memref<22x24xf32, #tpu.memory_space<vmem>>, %arg1: memref<16x16xf32, #tpu.memory_space<vmem>>, %arg2: memref<16x8xi32, #tpu.memory_space<vmem>>, %arg3: memref<176x128xf32, #tpu.memory_space<vmem>>, %arg4: memref<16x128xf32, #tpu.memory_space<vmem>>) attributes {dimension_semantics = [], scalar_prefetch = 0 : i64, scratch_operands = 0 : i64, tpu.core_type = #tpu.core_type<tc>} {
    %c0 = arith.constant 0 : index
    %c0_0 = arith.constant 0 : index
    %0 = vector.load %arg3[%c0, %c0_0] : memref<176x128xf32, #tpu.memory_space<vmem>>, vector<24x128xf32>
    %c24 = arith.constant 24 : index
    %c0_1 = arith.constant 0 : index
    %1 = vector.load %arg3[%c24, %c0_1] : memref<176x128xf32, #tpu.memory_space<vmem>>, vector<24x128xf32>
    %c48 = arith.constant 48 : index
    %c0_2 = arith.constant 0 : index
    %2 = vector.load %arg3[%c48, %c0_2] : memref<176x128xf32, #tpu.memory_space<vmem>>, vector<1x128xf32>
    %c56 = arith.constant 56 : index
    %c0_3 = arith.constant 0 : index
    %3 = vector.load %arg3[%c56, %c0_3] : memref<176x128xf32, #tpu.memory_space<vmem>>, vector<16x64xf32>
    %c72 = arith.constant 72 : index
    %c0_4 = arith.constant 0 : index
    %4 = vector.load %arg3[%c72, %c0_4] : memref<176x128xf32, #tpu.memory_space<vmem>>, vector<24x64xf32>
    %c96 = arith.constant 96 : index
    %c0_5 = arith.constant 0 : index
    %5 = vector.load %arg3[%c96, %c0_5] : memref<176x128xf32, #tpu.memory_space<vmem>>, vector<1x64xf32>
    %c104 = arith.constant 104 : index
    %c0_6 = arith.constant 0 : index
    %6 = vector.load %arg3[%c104, %c0_6] : memref<176x128xf32, #tpu.memory_space<vmem>>, vector<8x32xf32>
    %c111 = arith.constant 111 : index
    %c0_7 = arith.constant 0 : index
    %7 = vector.load %arg3[%c111, %c0_7] : memref<176x128xf32, #tpu.memory_space<vmem>>, vector<1x128xf32>
    %c112 = arith.constant 112 : index
    %c0_8 = arith.constant 0 : index
    %8 = vector.load %arg3[%c112, %c0_8] : memref<176x128xf32, #tpu.memory_space<vmem>>, vector<32x32xf32>
    %c144 = arith.constant 144 : index
    %c0_9 = arith.constant 0 : index
    %9 = vector.load %arg3[%c144, %c0_9] : memref<176x128xf32, #tpu.memory_space<vmem>>, vector<32x128xf32>
    %c0_10 = arith.constant 0 : index
    %c0_11 = arith.constant 0 : index
    %10 = vector.load %arg0[%c0_10, %c0_11] : memref<22x24xf32, #tpu.memory_space<vmem>>, vector<22x24xf32>
    %cst = arith.constant dense<0.000000e+00> : vector<22x128xf32>
    %11 = tpu.matmul %10, %0, %cst {dimension_numbers = #tpu.dot_dimension_numbers<[1], [0], [0], [1], [0, 0, 1, 1], [], []>} : vector<22x24xf32>, vector<24x128xf32>, vector<22x128xf32> -> vector<22x128xf32>
    %c0_12 = arith.constant 0 : index
    %c0_13 = arith.constant 0 : index
    %12 = vector.load %arg2[%c0_12, %c0_13] : memref<16x8xi32, #tpu.memory_space<vmem>>, vector<16x8xi32>
    %13 = tpu.iota {dimensions = array<i32: 1>} : vector<16x22xi32>
    %14 = vector.extract_strided_slice %12 {offsets = [0, 0], sizes = [16, 1], strides = [1, 1]} : vector<16x8xi32> to vector<16x1xi32>
    %15 = vector.broadcast %14 : vector<16x1xi32> to vector<16x22xi32>
    %16 = arith.cmpi eq, %13, %15 : vector<16x22xi32>
    %17 = arith.extui %16 : vector<16x22xi1> to vector<16x22xi32>
    %18 = arith.sitofp %17 : vector<16x22xi32> to vector<16x22xf32>
    %19 = vector.extract_strided_slice %12 {offsets = [0, 4], sizes = [16, 1], strides = [1, 1]} : vector<16x8xi32> to vector<16x1xi32>
    %20 = vector.broadcast %19 : vector<16x1xi32> to vector<16x22xi32>
    %21 = arith.cmpi eq, %13, %20 : vector<16x22xi32>
    %22 = arith.extui %21 : vector<16x22xi1> to vector<16x22xi32>
    %23 = arith.sitofp %22 : vector<16x22xi32> to vector<16x22xf32>
    %24 = arith.addf %18, %23 : vector<16x22xf32>
    %25 = vector.extract_strided_slice %12 {offsets = [0, 1], sizes = [16, 1], strides = [1, 1]} : vector<16x8xi32> to vector<16x1xi32>
    %26 = vector.broadcast %25 : vector<16x1xi32> to vector<16x22xi32>
    %27 = arith.cmpi eq, %13, %26 : vector<16x22xi32>
    %28 = arith.extui %27 : vector<16x22xi1> to vector<16x22xi32>
    %29 = arith.sitofp %28 : vector<16x22xi32> to vector<16x22xf32>
    %30 = vector.extract_strided_slice %12 {offsets = [0, 5], sizes = [16, 1], strides = [1, 1]} : vector<16x8xi32> to vector<16x1xi32>
    %31 = vector.broadcast %30 : vector<16x1xi32> to vector<16x22xi32>
    %32 = arith.cmpi eq, %13, %31 : vector<16x22xi32>
    %33 = arith.extui %32 : vector<16x22xi1> to vector<16x22xi32>
    %34 = arith.sitofp %33 : vector<16x22xi32> to vector<16x22xf32>
    %35 = arith.addf %29, %34 : vector<16x22xf32>
    %36 = vector.extract_strided_slice %12 {offsets = [0, 2], sizes = [16, 1], strides = [1, 1]} : vector<16x8xi32> to vector<16x1xi32>
    %37 = vector.broadcast %36 : vector<16x1xi32> to vector<16x22xi32>
    %38 = arith.cmpi eq, %13, %37 : vector<16x22xi32>
    %39 = arith.extui %38 : vector<16x22xi1> to vector<16x22xi32>
    %40 = arith.sitofp %39 : vector<16x22xi32> to vector<16x22xf32>
    %41 = vector.extract_strided_slice %12 {offsets = [0, 6], sizes = [16, 1], strides = [1, 1]} : vector<16x8xi32> to vector<16x1xi32>
    %42 = vector.broadcast %41 : vector<16x1xi32> to vector<16x22xi32>
    %43 = arith.cmpi eq, %13, %42 : vector<16x22xi32>
    %44 = arith.extui %43 : vector<16x22xi1> to vector<16x22xi32>
    %45 = arith.sitofp %44 : vector<16x22xi32> to vector<16x22xf32>
    %46 = arith.addf %40, %45 : vector<16x22xf32>
    %47 = vector.extract_strided_slice %12 {offsets = [0, 3], sizes = [16, 1], strides = [1, 1]} : vector<16x8xi32> to vector<16x1xi32>
    %48 = vector.broadcast %47 : vector<16x1xi32> to vector<16x22xi32>
    %49 = arith.cmpi eq, %13, %48 : vector<16x22xi32>
    %50 = arith.extui %49 : vector<16x22xi1> to vector<16x22xi32>
    %51 = arith.sitofp %50 : vector<16x22xi32> to vector<16x22xf32>
    %52 = vector.extract_strided_slice %12 {offsets = [0, 7], sizes = [16, 1], strides = [1, 1]} : vector<16x8xi32> to vector<16x1xi32>
    %53 = vector.broadcast %52 : vector<16x1xi32> to vector<16x22xi32>
    %54 = arith.cmpi eq, %13, %53 : vector<16x22xi32>
    %55 = arith.extui %54 : vector<16x22xi1> to vector<16x22xi32>
    %56 = arith.sitofp %55 : vector<16x22xi32> to vector<16x22xf32>
    %57 = arith.addf %51, %56 : vector<16x22xf32>
    %58 = tpu.concatenate %24, %35, %46, %57 in 0 : vector<16x22xf32>, vector<16x22xf32>, vector<16x22xf32>, vector<16x22xf32> -> vector<64x22xf32>
    %cst_14 = arith.constant dense<0.000000e+00> : vector<64x128xf32>
    %59 = tpu.matmul %58, %11, %cst_14 {dimension_numbers = #tpu.dot_dimension_numbers<[1], [0], [0], [1], [0, 0, 1, 1], [], []>} : vector<64x22xf32>, vector<22x128xf32>, vector<64x128xf32> -> vector<64x128xf32>
    %60 = vector.broadcast %2 : vector<1x128xf32> to vector<64x128xf32>
    %61 = arith.addf %59, %60 : vector<64x128xf32>
    %cst_15 = arith.constant 0.000000e+00 : f32
    %62 = vector.broadcast %cst_15 : f32 to vector<16x24xf32>
    %63 = vector.extract_strided_slice %61 {offsets = [0, 0], sizes = [16, 128], strides = [1, 1]} : vector<64x128xf32> to vector<16x128xf32>
    %64 = vector.extract_strided_slice %63 {offsets = [0, 0], sizes = [16, 72], strides = [1, 1]} : vector<16x128xf32> to vector<16x72xf32>
    %65 = arith.negf %64 : vector<16x72xf32>
    %66 = math.exp %65 : vector<16x72xf32>
    %cst_16 = arith.constant 1.000000e+00 : f32
    %67 = vector.broadcast %cst_16 : f32 to vector<16x72xf32>
    %68 = arith.addf %67, %66 : vector<16x72xf32>
    %69 = arith.divf %67, %68 : vector<16x72xf32>
    %70 = vector.extract_strided_slice %69 {offsets = [0, 0], sizes = [16, 24], strides = [1, 1]} : vector<16x72xf32> to vector<16x24xf32>
    %71 = vector.extract_strided_slice %69 {offsets = [0, 24], sizes = [16, 24], strides = [1, 1]} : vector<16x72xf32> to vector<16x24xf32>
    %72 = vector.extract_strided_slice %69 {offsets = [0, 48], sizes = [16, 24], strides = [1, 1]} : vector<16x72xf32> to vector<16x24xf32>
    %73 = vector.extract_strided_slice %63 {offsets = [0, 72], sizes = [16, 24], strides = [1, 1]} : vector<16x128xf32> to vector<16x24xf32>
    %74 = math.tanh %73 : vector<16x24xf32>
    %75 = arith.mulf %71, %62 : vector<16x24xf32>
    %76 = arith.mulf %70, %74 : vector<16x24xf32>
    %77 = arith.addf %75, %76 : vector<16x24xf32>
    %78 = math.tanh %77 : vector<16x24xf32>
    %79 = arith.mulf %72, %78 : vector<16x24xf32>
    %80 = vector.extract_strided_slice %61 {offsets = [16, 0], sizes = [16, 128], strides = [1, 1]} : vector<64x128xf32> to vector<16x128xf32>
    %cst_17 = arith.constant dense<0.000000e+00> : vector<16x128xf32>
    %81 = tpu.matmul %79, %1, %cst_17 {dimension_numbers = #tpu.dot_dimension_numbers<[1], [0], [0], [1], [0, 0, 1, 1], [], []>} : vector<16x24xf32>, vector<24x128xf32>, vector<16x128xf32> -> vector<16x128xf32>
    %82 = arith.addf %80, %81 : vector<16x128xf32>
    %83 = vector.extract_strided_slice %82 {offsets = [0, 0], sizes = [16, 72], strides = [1, 1]} : vector<16x128xf32> to vector<16x72xf32>
    %84 = arith.negf %83 : vector<16x72xf32>
    %85 = math.exp %84 : vector<16x72xf32>
    %cst_18 = arith.constant 1.000000e+00 : f32
    %86 = vector.broadcast %cst_18 : f32 to vector<16x72xf32>
    %87 = arith.addf %86, %85 : vector<16x72xf32>
    %88 = arith.divf %86, %87 : vector<16x72xf32>
    %89 = vector.extract_strided_slice %88 {offsets = [0, 0], sizes = [16, 24], strides = [1, 1]} : vector<16x72xf32> to vector<16x24xf32>
    %90 = vector.extract_strided_slice %88 {offsets = [0, 24], sizes = [16, 24], strides = [1, 1]} : vector<16x72xf32> to vector<16x24xf32>
    %91 = vector.extract_strided_slice %88 {offsets = [0, 48], sizes = [16, 24], strides = [1, 1]} : vector<16x72xf32> to vector<16x24xf32>
    %92 = vector.extract_strided_slice %82 {offsets = [0, 72], sizes = [16, 24], strides = [1, 1]} : vector<16x128xf32> to vector<16x24xf32>
    %93 = math.tanh %92 : vector<16x24xf32>
    %94 = arith.mulf %90, %77 : vector<16x24xf32>
    %95 = arith.mulf %89, %93 : vector<16x24xf32>
    %96 = arith.addf %94, %95 : vector<16x24xf32>
    %97 = math.tanh %96 : vector<16x24xf32>
    %98 = arith.mulf %91, %97 : vector<16x24xf32>
    %99 = vector.extract_strided_slice %61 {offsets = [32, 0], sizes = [16, 128], strides = [1, 1]} : vector<64x128xf32> to vector<16x128xf32>
    %cst_19 = arith.constant dense<0.000000e+00> : vector<16x128xf32>
    %100 = tpu.matmul %98, %1, %cst_19 {dimension_numbers = #tpu.dot_dimension_numbers<[1], [0], [0], [1], [0, 0, 1, 1], [], []>} : vector<16x24xf32>, vector<24x128xf32>, vector<16x128xf32> -> vector<16x128xf32>
    %101 = arith.addf %99, %100 : vector<16x128xf32>
    %102 = vector.extract_strided_slice %101 {offsets = [0, 0], sizes = [16, 72], strides = [1, 1]} : vector<16x128xf32> to vector<16x72xf32>
    %103 = arith.negf %102 : vector<16x72xf32>
    %104 = math.exp %103 : vector<16x72xf32>
    %cst_20 = arith.constant 1.000000e+00 : f32
    %105 = vector.broadcast %cst_20 : f32 to vector<16x72xf32>
    %106 = arith.addf %105, %104 : vector<16x72xf32>
    %107 = arith.divf %105, %106 : vector<16x72xf32>
    %108 = vector.extract_strided_slice %107 {offsets = [0, 0], sizes = [16, 24], strides = [1, 1]} : vector<16x72xf32> to vector<16x24xf32>
    %109 = vector.extract_strided_slice %107 {offsets = [0, 24], sizes = [16, 24], strides = [1, 1]} : vector<16x72xf32> to vector<16x24xf32>
    %110 = vector.extract_strided_slice %107 {offsets = [0, 48], sizes = [16, 24], strides = [1, 1]} : vector<16x72xf32> to vector<16x24xf32>
    %111 = vector.extract_strided_slice %101 {offsets = [0, 72], sizes = [16, 24], strides = [1, 1]} : vector<16x128xf32> to vector<16x24xf32>
    %112 = math.tanh %111 : vector<16x24xf32>
    %113 = arith.mulf %109, %96 : vector<16x24xf32>
    %114 = arith.mulf %108, %112 : vector<16x24xf32>
    %115 = arith.addf %113, %114 : vector<16x24xf32>
    %116 = math.tanh %115 : vector<16x24xf32>
    %117 = arith.mulf %110, %116 : vector<16x24xf32>
    %118 = vector.extract_strided_slice %61 {offsets = [48, 0], sizes = [16, 128], strides = [1, 1]} : vector<64x128xf32> to vector<16x128xf32>
    %cst_21 = arith.constant dense<0.000000e+00> : vector<16x128xf32>
    %119 = tpu.matmul %117, %1, %cst_21 {dimension_numbers = #tpu.dot_dimension_numbers<[1], [0], [0], [1], [0, 0, 1, 1], [], []>} : vector<16x24xf32>, vector<24x128xf32>, vector<16x128xf32> -> vector<16x128xf32>
    %120 = arith.addf %118, %119 : vector<16x128xf32>
    %121 = vector.extract_strided_slice %120 {offsets = [0, 0], sizes = [16, 72], strides = [1, 1]} : vector<16x128xf32> to vector<16x72xf32>
    %122 = arith.negf %121 : vector<16x72xf32>
    %123 = math.exp %122 : vector<16x72xf32>
    %cst_22 = arith.constant 1.000000e+00 : f32
    %124 = vector.broadcast %cst_22 : f32 to vector<16x72xf32>
    %125 = arith.addf %124, %123 : vector<16x72xf32>
    %126 = arith.divf %124, %125 : vector<16x72xf32>
    %127 = vector.extract_strided_slice %126 {offsets = [0, 0], sizes = [16, 24], strides = [1, 1]} : vector<16x72xf32> to vector<16x24xf32>
    %128 = vector.extract_strided_slice %126 {offsets = [0, 24], sizes = [16, 24], strides = [1, 1]} : vector<16x72xf32> to vector<16x24xf32>
    %129 = vector.extract_strided_slice %126 {offsets = [0, 48], sizes = [16, 24], strides = [1, 1]} : vector<16x72xf32> to vector<16x24xf32>
    %130 = vector.extract_strided_slice %120 {offsets = [0, 72], sizes = [16, 24], strides = [1, 1]} : vector<16x128xf32> to vector<16x24xf32>
    %131 = math.tanh %130 : vector<16x24xf32>
    %132 = arith.mulf %128, %115 : vector<16x24xf32>
    %133 = arith.mulf %127, %131 : vector<16x24xf32>
    %134 = arith.addf %132, %133 : vector<16x24xf32>
    %135 = math.tanh %134 : vector<16x24xf32>
    %136 = arith.mulf %129, %135 : vector<16x24xf32>
    %c0_23 = arith.constant 0 : index
    %c0_24 = arith.constant 0 : index
    %137 = vector.load %arg1[%c0_23, %c0_24] : memref<16x16xf32, #tpu.memory_space<vmem>>, vector<16x16xf32>
    %cst_25 = arith.constant dense<0.000000e+00> : vector<16x64xf32>
    %138 = tpu.matmul %137, %3, %cst_25 {dimension_numbers = #tpu.dot_dimension_numbers<[1], [0], [0], [1], [0, 0, 1, 1], [], []>} : vector<16x16xf32>, vector<16x64xf32>, vector<16x64xf32> -> vector<16x64xf32>
    %cst_26 = arith.constant dense<0.000000e+00> : vector<16x64xf32>
    %139 = tpu.matmul %136, %4, %cst_26 {dimension_numbers = #tpu.dot_dimension_numbers<[1], [0], [0], [1], [0, 0, 1, 1], [], []>} : vector<16x24xf32>, vector<24x64xf32>, vector<16x64xf32> -> vector<16x64xf32>
    %140 = arith.addf %138, %139 : vector<16x64xf32>
    %141 = vector.broadcast %5 : vector<1x64xf32> to vector<16x64xf32>
    %142 = arith.addf %140, %141 : vector<16x64xf32>
    %cst_27 = arith.constant 5.000000e-01 : f32
    %143 = vector.broadcast %cst_27 : f32 to vector<16x64xf32>
    %144 = arith.mulf %143, %142 : vector<16x64xf32>
    %cst_28 = arith.constant 4.471500e-02 : f32
    %145 = vector.broadcast %cst_28 : f32 to vector<16x64xf32>
    %146 = arith.mulf %145, %142 : vector<16x64xf32>
    %147 = arith.mulf %146, %142 : vector<16x64xf32>
    %148 = arith.mulf %147, %142 : vector<16x64xf32>
    %149 = arith.addf %142, %148 : vector<16x64xf32>
    %cst_29 = arith.constant 0.797884583 : f32
    %150 = vector.broadcast %cst_29 : f32 to vector<16x64xf32>
    %151 = arith.mulf %150, %149 : vector<16x64xf32>
    %152 = math.tanh %151 : vector<16x64xf32>
    %cst_30 = arith.constant 1.000000e+00 : f32
    %153 = vector.broadcast %cst_30 : f32 to vector<16x64xf32>
    %154 = arith.addf %153, %152 : vector<16x64xf32>
    %155 = arith.mulf %144, %154 : vector<16x64xf32>
    %156 = vector.extract_strided_slice %155 {offsets = [0, 0], sizes = [16, 32], strides = [1, 1]} : vector<16x64xf32> to vector<16x32xf32>
    %157 = vector.extract_strided_slice %155 {offsets = [0, 32], sizes = [16, 32], strides = [1, 1]} : vector<16x64xf32> to vector<16x32xf32>
    %158 = arith.addf %156, %157 : vector<16x32xf32>
    %159 = vector.extract_strided_slice %6 {offsets = [0, 0], sizes = [1, 32], strides = [1, 1]} : vector<8x32xf32> to vector<1x32xf32>
    %160 = vector.extract_strided_slice %6 {offsets = [1, 0], sizes = [1, 32], strides = [1, 1]} : vector<8x32xf32> to vector<1x32xf32>
    %161 = vector.extract_strided_slice %6 {offsets = [2, 0], sizes = [1, 32], strides = [1, 1]} : vector<8x32xf32> to vector<1x32xf32>
    %162 = vector.extract_strided_slice %6 {offsets = [3, 0], sizes = [1, 32], strides = [1, 1]} : vector<8x32xf32> to vector<1x32xf32>
    %163 = vector.extract_strided_slice %6 {offsets = [4, 0], sizes = [1, 32], strides = [1, 1]} : vector<8x32xf32> to vector<1x32xf32>
    %164 = vector.extract_strided_slice %6 {offsets = [5, 0], sizes = [1, 32], strides = [1, 1]} : vector<8x32xf32> to vector<1x32xf32>
    %165 = vector.extract_strided_slice %6 {offsets = [6, 0], sizes = [1, 32], strides = [1, 1]} : vector<8x32xf32> to vector<1x32xf32>
    %cst_31 = arith.constant dense<0.000000e+00> : vector<16xf32>
    %166 = vector.multi_reduction <add>, %158, %cst_31 [1] : vector<16x32xf32> to vector<16xf32>
    %167 = vector.shape_cast %166 : vector<16xf32> to vector<16x1xf32>
    %cst_32 = arith.constant 3.200000e+01 : f32
    %168 = vector.broadcast %cst_32 : f32 to vector<16x1xf32>
    %169 = arith.divf %167, %168 : vector<16x1xf32>
    %170 = vector.broadcast %169 : vector<16x1xf32> to vector<16x32xf32>
    %171 = arith.subf %158, %170 : vector<16x32xf32>
    %172 = arith.mulf %171, %171 : vector<16x32xf32>
    %cst_33 = arith.constant dense<0.000000e+00> : vector<16xf32>
    %173 = vector.multi_reduction <add>, %172, %cst_33 [1] : vector<16x32xf32> to vector<16xf32>
    %174 = vector.shape_cast %173 : vector<16xf32> to vector<16x1xf32>
    %cst_34 = arith.constant 3.200000e+01 : f32
    %175 = vector.broadcast %cst_34 : f32 to vector<16x1xf32>
    %176 = arith.divf %174, %175 : vector<16x1xf32>
    %cst_35 = arith.constant 9.99999974E-6 : f32
    %177 = vector.broadcast %cst_35 : f32 to vector<16x1xf32>
    %178 = arith.addf %176, %177 : vector<16x1xf32>
    %179 = math.rsqrt %178 : vector<16x1xf32>
    %180 = vector.broadcast %179 : vector<16x1xf32> to vector<16x32xf32>
    %181 = arith.mulf %171, %180 : vector<16x32xf32>
    %182 = vector.broadcast %159 : vector<1x32xf32> to vector<16x32xf32>
    %183 = arith.mulf %181, %182 : vector<16x32xf32>
    %184 = vector.broadcast %160 : vector<1x32xf32> to vector<16x32xf32>
    %185 = arith.addf %183, %184 : vector<16x32xf32>
    %186 = vector.broadcast %163 : vector<1x32xf32> to vector<16x32xf32>
    %187 = arith.subf %185, %186 : vector<16x32xf32>
    %cst_36 = arith.constant 9.99999974E-6 : f32
    %188 = vector.broadcast %cst_36 : f32 to vector<1x32xf32>
    %189 = arith.addf %164, %188 : vector<1x32xf32>
    %190 = math.rsqrt %189 : vector<1x32xf32>
    %191 = vector.broadcast %190 : vector<1x32xf32> to vector<16x32xf32>
    %192 = arith.mulf %187, %191 : vector<16x32xf32>
    %193 = vector.broadcast %161 : vector<1x32xf32> to vector<16x32xf32>
    %194 = arith.mulf %192, %193 : vector<16x32xf32>
    %195 = vector.broadcast %162 : vector<1x32xf32> to vector<16x32xf32>
    %196 = arith.addf %194, %195 : vector<16x32xf32>
    %cst_37 = arith.constant dense<0.000000e+00> : vector<16x32xf32>
    %197 = tpu.matmul %196, %8, %cst_37 {dimension_numbers = #tpu.dot_dimension_numbers<[1], [0], [0], [1], [0, 0, 1, 1], [], []>} : vector<16x32xf32>, vector<32x32xf32>, vector<16x32xf32> -> vector<16x32xf32>
    %198 = vector.broadcast %165 : vector<1x32xf32> to vector<16x32xf32>
    %199 = arith.addf %197, %198 : vector<16x32xf32>
    %cst_38 = arith.constant 5.000000e-01 : f32
    %200 = vector.broadcast %cst_38 : f32 to vector<16x32xf32>
    %201 = arith.mulf %200, %199 : vector<16x32xf32>
    %cst_39 = arith.constant 4.471500e-02 : f32
    %202 = vector.broadcast %cst_39 : f32 to vector<16x32xf32>
    %203 = arith.mulf %202, %199 : vector<16x32xf32>
    %204 = arith.mulf %203, %199 : vector<16x32xf32>
    %205 = arith.mulf %204, %199 : vector<16x32xf32>
    %206 = arith.addf %199, %205 : vector<16x32xf32>
    %cst_40 = arith.constant 0.797884583 : f32
    %207 = vector.broadcast %cst_40 : f32 to vector<16x32xf32>
    %208 = arith.mulf %207, %206 : vector<16x32xf32>
    %209 = math.tanh %208 : vector<16x32xf32>
    %cst_41 = arith.constant 1.000000e+00 : f32
    %210 = vector.broadcast %cst_41 : f32 to vector<16x32xf32>
    %211 = arith.addf %210, %209 : vector<16x32xf32>
    %212 = arith.mulf %201, %211 : vector<16x32xf32>
    %cst_42 = arith.constant dense<0.000000e+00> : vector<16x128xf32>
    %213 = tpu.matmul %212, %9, %cst_42 {dimension_numbers = #tpu.dot_dimension_numbers<[1], [0], [0], [1], [0, 0, 1, 1], [], []>} : vector<16x32xf32>, vector<32x128xf32>, vector<16x128xf32> -> vector<16x128xf32>
    %214 = vector.broadcast %7 : vector<1x128xf32> to vector<16x128xf32>
    %215 = arith.addf %213, %214 : vector<16x128xf32>
    %c0_43 = arith.constant 0 : index
    %c0_44 = arith.constant 0 : index
    %216 = vector.load %arg4[%c0_43, %c0_44] : memref<16x128xf32, #tpu.memory_space<vmem>>, vector<16x128xf32>
    tpu.vector_store %arg4[%c0_43, %c0_44], %215 {strides = array<i32>} : memref<16x128xf32, #tpu.memory_space<vmem>>, vector<16x128xf32>,
    return
  }
}

</mosaic_0001>

<bundles_post_ra>
// kernel: hetero_graphsage_forward.1
= control target key start
LH: loop header
LB: loop body
LE: loop exit
PB: predicated region body
PF: predicated region fallthrough
CT: control target
= control target key end

     0   :  { %9 = vsyncpa [#allocation3], 0  ;;  %s1646_s15 = smov [#allocation2]   ;;  %s1931_s0 = inlined_call_operand.vmem [shape: f32[22,24], index: 0, kind: input, shape index: {}]   ;;  %s1932_s1 = inlined_call_operand.hbm [shape: f32[16,16], index: 1, kind: input, shape index: {}]   ;;  %s1933_s2 = inlined_call_operand.vmem [shape: s32[16,8], index: 2, kind: input, shape index: {}]   ;;  %s1934_s3 = inlined_call_operand.vmem [shape: f32[176,128], index: 3, kind: input, shape index: {}]   ;;  %s1935_s4 = inlined_call_operand.vmem [shape: f32[16,128], index: 4, kind: output, shape index: {}]  }
   0x1   :  { %s17_s16 = sshll.u32 %s1646_s15, 4  ;;  %s18_s16 = int_to_ptr.vmem [resolvable:$true] %s17_s16 }
   0x2   :  { %s1632_s17 = scalar_lea.vmem %s18_s16, 256  ;;  %p1637_p1 = scmp.lt.s32.totalorder %s18_s16, %s18_s16 }
   0x3   :  { %p1633_p0 = scmp.ne.s32.totalorder %s18_s16, %s1632_s17  ;;  %p1638_p2 = scmp.lt.s32.totalorder %s1632_s17, %s1632_s17 }
   0x5   :  { %p1639_p3 = por %p1638_p2, %p1637_p1 }
   0x7   :  { %p1640_p4 = pnand %p1639_p3, %p1633_p0 }
   0x9   :  { %1643 = shalt.err (!%p1640_p4)
}
   0xa   :  { %s1647_s18 = smov 128   ;;  %s1648_s19 = smov 8  }
   0xb   :  { %23 = dma.hbm_to_vmem [thread:$0]  %s1932_s1, 256, %s18_s16, [#allocation3], %s1647_s18, %s1647_s18, %s1648_s19  }
   0xc   :  { %1644 = dma.done.wait [#allocation3], 256  }
   0xd   :  { %1645 = vsyncadd [#allocation3], 4294967040  ;;  %v1649_v0 = vmov 0.0   ;;  %vm1650_vm0 = vmmov 0   ;;  %v1651_v1 = vmov 0   ;;  %v33_v2 = vld [vmem:[%s1934_s3 + $0x10] sm:$0xff]  ;;  %v149_v11 = vlaneseq }
   0xe   :  { %1416 = vmatprep.subr.mxu0 %v1649_v0  ;;  %1422 = vmatprep.mubr.msk.f32.mxu0 %vm1650_vm0, %v1649_v0  ;;  %v32_v3 = vld [vmem:[%s1934_s3 + $0x8] sm:$0xff]  ;;  %v31_v4 = vld [vmem:[%s1934_s3] sm:$0xff]  ;;  %vm57_vm1 = vcmask 195584   ;;  %v1652_v9 = vmov 4   ;;  %v56_v10 = vld [vmem:[%s1931_s0 + $0x10] sm:$0x3f] }
   0xf   :  { %1531 = vset.pattern.permute.xlu0 %v1651_v1  ;;  %1533 = vset.pattern.permute.xlu1 %v1651_v1  ;;  %v1707_v5 = vld [vmem:[%s1933_s2] sm:$0xff]  ;;  %v1712_v6 = vld [vmem:[%s1933_s2 + $0x8] sm:$0xff]  ;;  %v1736_v12 = vand.u32 127, %v149_v11  ;;  %vm259_vm4 = vcmask 179200   ;;  %vm284_vm5 = vcmask 1045504   ;;  %s1653_s11 = smov 56  }
  0x10   :  { %1417 = vmatpush3.msra.mxu0 %v33_v2  ;;  %v54_v7 = vld [vmem:[%s1931_s0] sm:$0xff]  ;;  %152 = vperm.xlu0 %1531, %v1707_v5   ;;  %v55_v8 = vld [vmem:[%s1931_s0 + $0x8] sm:$0xff]  ;;  %v1751_v29 = vld [vmem:[%s1934_s3 + $0x30] ss:$0 sm:$0xff]  ;;  %s1654_s12 = smov 24   ;;  %v1655_v48 = vmov 1  }
  0x11   :  { %1418 = vmatprep.subr.mxu0 %v1649_v0  ;;  %155 = vperm.xlu1 %1533, %v1712_v6   ;;  %v1656_v49 = vmov 5   ;;  %v36_v58 = vld [vmem:[%s1934_s3 + $0x28] sm:$0xff]  ;;  %v35_v59 = vld [vmem:[%s1934_s3 + $0x20] sm:$0xff]  ;;  %v34_v60 = vld [vmem:[%s1934_s3 + $0x18] sm:$0xff]  ;;  %s1657_s19 = smov 80   ;;  %s1662_s5 = smov 96  }
  0x12   :  { %1419 = vmatpush3.msra.mxu0 %v32_v3 }
  0x13   :  { %1420 = vmatprep.subr.mxu0 %v1649_v0 }
  0x14   :  { %1421 = vmatpush3.msra.mxu0 %v31_v4  ;;  %1532 = vset.pattern.permute.xlu0 %v1652_v9 }
  0x15   :  { %1423 = vmatmul.mubr.msk.f32.vlgmr.msra.gmra.mxu0 %vm57_vm1, %v54_v7  ;;  %1534 = vset.pattern.permute.xlu1 %v1652_v9 }
  0x16   :  { %1425 = vmatprep.mubr.msk.f32.mxu0 %vm1650_vm0, %v1649_v0  ;;  %164 = vperm.xlu0 %1532, %v1707_v5  }
  0x17   :  { %167 = vperm.xlu1 %1534, %v1712_v6   ;;  %1449 = vmatprep.subr.mxu0 %v36_v58 }
  0x18   :  { %1450 = vmatpush3.msra.mxu0 %v36_v58 }
  0x19   :  { %1426 = vmatmul.mubr.msk.f32.gmra.mxu0 %vm57_vm1, %v55_v8  ;;  %1451 = vmatprep.subr.mxu0 %v35_v59 }
  0x1a   :  { %1428 = vmatprep.mubr.msk.f32.mxu0 %vm1650_vm0, %v1649_v0  ;;  %1536 = vset.pattern.permute.xlu0 %v1656_v49 }
  0x1b   :  { %1535 = vset.pattern.permute.xlu1 %v1655_v48  ;;  %1452 = vmatpush3.msra.mxu0 %v35_v59 }
  0x1c   :  { %1453 = vmatprep.subr.mxu0 %v34_v60 }
  0x1d   :  { %1429 = vmatmul.mubr.msk.f32.gmra.mxu0 %vm57_vm1, %v56_v10 }
  0x1e   :  { %1454 = vmatpush3.msra.mxu0 %v34_v60 }
  0x1f   :  { %1467 = vmatprep.subr.mxu0 %v36_v58 }
  0x8b   :  { %v153_v13 = vpop.permute.xlu0 %152 }
  0x8c   :  { %vm157_vm2 = vcmp.eq.s32.totalorder %v1736_v12, %v153_v13  ;;  %v156_v18 = vpop.permute.xlu1 %155 }
  0x8d   :  { %v1313_v14 = vsel %vm157_vm2, 1.0, %v1649_v0  ;;  %vm158_vm6 = vcmp.eq.s32.totalorder %v1736_v12, %v156_v18 }
  0x8e   :  { %v1314_v25 = vsel %vm158_vm6, 1.0, %v1649_v0 }
  0x91   :  { %v165_v15 = vpop.permute.xlu0 %164 }
  0x92   :  { %vm169_vm3 = vcmp.eq.s32.totalorder %v1736_v12, %v165_v15  ;;  %v168_v22 = vpop.permute.xlu1 %167 }
  0x93   :  { %v1315_v16 = vsel %vm169_vm3, 1.0, %v1649_v0  ;;  %vm170_vm7 = vcmp.eq.s32.totalorder %v1736_v12, %v168_v22 }
  0x94   :  { %v175_v17 = vadd.f32 %v1315_v16, %v1313_v14  ;;  %v1316_v26 = vsel %vm170_vm7, 1.0, %v1649_v0 }
  0x95   :  { %v176_v28 = vadd.f32 %v1316_v26, %v1314_v25 }
  0x96   :  { %1437 = vmatprep.mubr.msk.f32.mxu1 %vm259_vm4, %v175_v17 }
  0xd5   :  { %v133_v19 = vpop.f32.mrf.mxu0 }
  0xd7   :  { %v1424_v20 = vpop.f32.mrf.mxu0 }
  0xd9   :  { %v138_v21 = vpop.f32.mrf.mxu0 }
  0xdb   :  { %v1427_v23 = vpop.f32.mrf.mxu0 }
  0xdd   :  { %v143_v24 = vpop.f32.mrf.mxu0 }
  0xde   :  { %1431 = vmatprep.subr.msk.mxu1 %vm284_vm5, %v143_v24 }
  0xdf   :  { %v1430_v27 = vpop.f32.mrf.mxu0  ;;  %1432 = vmatpush3.msk.msra.mxu1 %vm284_vm5, %v143_v24 }
  0xe0   :  { %1433 = vmatprep.subr.mxu1 %v138_v21 }
  0xe1   :  { %1434 = vmatpush3.msra.mxu1 %v138_v21 }
  0xe2   :  { %1435 = vmatprep.subr.mxu1 %v133_v19 }
  0xe3   :  { %1436 = vmatpush3.msra.mxu1 %v133_v19 }
  0xe4   :  { %1438 = vmatmul.mubr.msk.f32.vlgmr.msra.gmra.mxu1 %vm259_vm4, %v176_v28  ;;  %1458 = vmatprep.subr.mxu1 %v36_v58 }
  0xe5   :  { %1459 = vmatpush3.msra.mxu1 %v36_v58 }
  0xe6   :  { %1460 = vmatprep.subr.mxu1 %v35_v59 }
  0xe7   :  { %1461 = vmatpush3.msra.mxu1 %v35_v59 }
  0xe8   :  { %1462 = vmatprep.subr.mxu1 %v34_v60 }
  0xe9   :  { %1463 = vmatpush3.msra.mxu1 %v34_v60 }
 0x1a4   :  { %v1439_v30 = vpop.f32.mrf.mxu1 }
 0x1a5   :  { %v360_v31 = vadd.f32 %v1439_v30, %v1751_v29 }
 0x1a6   :  { %v354_v32 = vpop.f32.mrf.mxu1 }
 0x1a7   :  { %1546 = vtanh.f32 %v360_v31  ;;  %v355_v33 = vadd.f32 %v1751_v29, %v354_v32  ;;  %v1340_v36 = vmul.f32 -1.442695, %v360_v31 }
 0x1a9   :  { %1548 = vtanh.f32 %v355_v33  ;;  %v1339_v37 = vmul.f32 -1.442695, %v355_v33 }
 0x1aa   :  { %1550 = vpow2.f32 %v1340_v36 }
 0x1ab   :  { %1552 = vpow2.f32 %v1339_v37 }
 0x1b4   :  { %v1547_v34 = vpop.eup %1546 }
 0x1b5   :  { %413 = vrot.lane.b32.xlu0 %v1547_v34, %s1653_s11 }
 0x1b6   :  { %v1549_v35 = vpop.eup %1548 }
 0x1b7   :  { %411 = vrot.lane.b32.xlu1 %v1549_v35, %s1653_s11  ;;  %v1551_v38 = vpop.eup %1550 }
 0x1b8   :  { %v1553_v39 = vpop.eup %1552  ;;  %v400_v40 = vadd.f32 1.0, %v1551_v38 }
 0x1b9   :  { %v399_v41 = vadd.f32 1.0, %v1553_v39 }
 0x1ba   :  { %1554 = vrcp.f32 %v400_v40 }
 0x1bb   :  { %1556 = vrcp.f32 %v399_v41  ;;  %v1658_v41 = vmov 6  }
 0x1c7   :  { %v1555_v42 = vpop.eup %1554 }
 0x1c8   :  { %v1557_v45 = vpop.eup %1556  ;;  %v408_v50 = vmul.f32 0.0, %v1555_v42 }
 0x1c9   :  { %v407_v53 = vmul.f32 0.0, %v1557_v45 }
 0x227   :  { %v414_v43 = vpop.permute.xlu0 %413 }
 0x228   :  { %v418_v44 = vmul.f32 %v1555_v42, %v414_v43 }
 0x229   :  { %v412_v46 = vpop.permute.xlu1 %411 }
 0x22a   :  { %423 = vrot.lane.b32.xlu0 %v418_v44, %s1654_s12  ;;  %v417_v47 = vmul.f32 %v1557_v45, %v412_v46 }
 0x22c   :  { %421 = vrot.lane.b32.xlu1 %v417_v47, %s1654_s12 }
 0x29c   :  { %v424_v51 = vpop.permute.xlu0 %423 }
 0x29d   :  { %v1759_v52 = vadd.f32 %v424_v51, %v408_v50  ;;  %v1660_v51 = vmov 3  }
 0x29e   :  { %v422_v54 = vpop.permute.xlu1 %421 }
 0x29f   :  { %1558 = vtanh.f32 %v1759_v52  ;;  %v1762_v55 = vadd.f32 %v422_v54, %v407_v53 }
 0x2a1   :  { %1560 = vtanh.f32 %v1762_v55 }
 0x2ac   :  { %v1559_v56 = vpop.eup %1558 }
 0x2ad   :  { %435 = vrot.lane.b32.xlu0 %v1559_v56, %s1654_s12 }
 0x2ae   :  { %v1561_v57 = vpop.eup %1560 }
 0x2af   :  { %433 = vrot.lane.b32.xlu1 %v1561_v57, %s1654_s12 }
 0x2b1   :  { %190 = vperm.xlu0 %1536, %v1707_v5  }
 0x2b3   :  { %178 = vperm.xlu1 %1535, %v1707_v5  }
 0x2b7   :  { %181 = vperm.xlu1 %1535, %v1712_v6  }
 0x2bb   :  { %1537 = vset.pattern.permute.xlu1 %v1656_v49 }
 0x2bc   :  { %193 = vperm.xlu1 %1537, %v1712_v6  }
 0x2c0   :  { %1539 = vset.pattern.permute.xlu1 %v1658_v41 }
 0x31f   :  { %v436_v61 = vpop.permute.xlu0 %435 }
 0x320   :  { %v440_v62 = vmul.f32 %v1555_v42, %v436_v61  ;;  %v1659_v42 = vmov 2  }
 0x321   :  { %v434_v63 = vpop.permute.xlu1 %433  ;;  %1538 = vset.pattern.permute.xlu0 %v1659_v42 }
 0x322   :  { %445 = vrot.lane.b32.xlu1 %v440_v62, %s1657_s19  ;;  %v439_v1 = vmul.f32 %v1557_v45, %v434_v63 }
 0x324   :  { %443 = vrot.lane.b32.xlu0 %v439_v1, %s1657_s19 }
 0x32c   :  { %v191_v2 = vpop.permute.xlu0 %190 }
 0x32d   :  { %vm195_vm8 = vcmp.eq.s32.totalorder %v1736_v12, %v191_v2 }
 0x32e   :  { %v179_v3 = vpop.permute.xlu1 %178  ;;  %v1319_v4 = vsel %vm195_vm8, 1.0, %v1649_v0 }
 0x32f   :  { %vm183_vm9 = vcmp.eq.s32.totalorder %v1736_v12, %v179_v3 }
 0x330   :  { %v1317_v7 = vsel %vm183_vm9, 1.0, %v1649_v0 }
 0x331   :  { %v201_v8 = vadd.f32 %v1319_v4, %v1317_v7 }
 0x332   :  { %v182_v9 = vpop.permute.xlu1 %181 }
 0x333   :  { %1440 = vmatprep.mubr.msk.f32.mxu1 %vm259_vm4, %v201_v8  ;;  %vm184_vm10 = vcmp.eq.s32.totalorder %v1736_v12, %v182_v9 }
 0x334   :  { %v1318_v10 = vsel %vm184_vm10, 1.0, %v1649_v0 }
 0x337   :  { %v194_v13 = vpop.permute.xlu1 %193 }
 0x338   :  { %vm196_vm11 = vcmp.eq.s32.totalorder %v1736_v12, %v194_v13 }
 0x339   :  { %v1320_v14 = vsel %vm196_vm11, 1.0, %v1649_v0 }
 0x33a   :  { %v202_v15 = vadd.f32 %v1320_v14, %v1318_v10 }
 0x33c   :  { %1441 = vmatmul.mubr.msk.f32.gmra.mxu1 %vm259_vm4, %v202_v15 }
 0x394   :  { %v446_v17 = vpop.permute.xlu1 %445 }
 0x396   :  { %v444_v16 = vpop.permute.xlu0 %443 }
 0x397   :  { %1455 = vmatprep.mubr.msk.f32.mxu0 %vm57_vm1, %v444_v16 }
 0x398   :  { %1456 = vmatmul.mubr.msk.f32.vlgmr.msra.gmra.mxu0 %vm57_vm1, %v446_v17 }
 0x399   :  { %1468 = vmatpush3.msra.mxu0 %v36_v58 }
 0x39a   :  { %1469 = vmatprep.subr.mxu0 %v35_v59 }
 0x39b   :  { %1470 = vmatpush3.msra.mxu0 %v35_v59 }
 0x39c   :  { %1471 = vmatprep.subr.mxu0 %v34_v60 }
 0x39d   :  { %1472 = vmatpush3.msra.mxu0 %v34_v60 }
 0x3fc   :  { %v1442_v18 = vpop.f32.mrf.mxu1 }
 0x3fd   :  { %v370_v20 = vadd.f32 %v1442_v18, %v1751_v29 }
 0x3fe   :  { %v364_v19 = vpop.f32.mrf.mxu1 }
 0x3ff   :  { %v365_v22 = vadd.f32 %v1751_v29, %v364_v19 }
 0x458   :  { %v1457_v21 = vpop.f32.mrf.mxu0 }
 0x459   :  { %v527_v23 = vadd.f32 %v1457_v21, %v370_v20 }
 0x45a   :  { %v517_v24 = vpop.f32.mrf.mxu0 }
 0x45b   :  { %1562 = vtanh.f32 %v527_v23  ;;  %v526_v25 = vadd.f32 %v517_v24, %v365_v22  ;;  %v1344_v28 = vmul.f32 -1.442695, %v527_v23 }
 0x45d   :  { %1564 = vtanh.f32 %v526_v25  ;;  %v1343_v30 = vmul.f32 -1.442695, %v526_v25 }
 0x45e   :  { %1566 = vpow2.f32 %v1344_v28 }
 0x45f   :  { %1568 = vpow2.f32 %v1343_v30 }
 0x468   :  { %v1563_v26 = vpop.eup %1562 }
 0x469   :  { %548 = vrot.lane.b32.xlu1 %v1563_v26, %s1653_s11 }
 0x46a   :  { %v1565_v27 = vpop.eup %1564 }
 0x46b   :  { %546 = vrot.lane.b32.xlu0 %v1565_v27, %s1653_s11  ;;  %v1567_v31 = vpop.eup %1566 }
 0x46c   :  { %v1569_v32 = vpop.eup %1568  ;;  %v535_v33 = vadd.f32 1.0, %v1567_v31 }
 0x46d   :  { %v534_v34 = vadd.f32 1.0, %v1569_v32 }
 0x46e   :  { %1570 = vrcp.f32 %v535_v33 }
 0x46f   :  { %1572 = vrcp.f32 %v534_v34 }
 0x47b   :  { %v1571_v35 = vpop.eup %1570 }
 0x47c   :  { %v1573_v38 = vpop.eup %1572  ;;  %v543_v43 = vmul.f32 %v1571_v35, %v1759_v52  ;;  %v1661_v52 = vmov 7  }
 0x47d   :  { %v542_v46 = vmul.f32 %v1573_v38, %v1762_v55 }
 0x4db   :  { %v549_v36 = vpop.permute.xlu1 %548 }
 0x4dc   :  { %v553_v37 = vmul.f32 %v1571_v35, %v549_v36 }
 0x4dd   :  { %v547_v39 = vpop.permute.xlu0 %546 }
 0x4de   :  { %558 = vrot.lane.b32.xlu1 %v553_v37, %s1654_s12  ;;  %v552_v40 = vmul.f32 %v1573_v38, %v547_v39 }
 0x4e0   :  { %556 = vrot.lane.b32.xlu0 %v552_v40, %s1654_s12 }
 0x550   :  { %v559_v44 = vpop.permute.xlu1 %558 }
 0x551   :  { %v1801_v45 = vadd.f32 %v559_v44, %v543_v43 }
 0x552   :  { %v557_v47 = vpop.permute.xlu0 %556 }
 0x553   :  { %1574 = vtanh.f32 %v1801_v45  ;;  %v1805_v48 = vadd.f32 %v557_v47, %v542_v46 }
 0x555   :  { %1576 = vtanh.f32 %v1805_v48 }
 0x560   :  { %v1575_v49 = vpop.eup %1574 }
 0x561   :  { %570 = vrot.lane.b32.xlu1 %v1575_v49, %s1654_s12 }
 0x562   :  { %v1577_v50 = vpop.eup %1576 }
 0x563   :  { %568 = vrot.lane.b32.xlu0 %v1577_v50, %s1654_s12 }
 0x565   :  { %216 = vperm.xlu1 %1539, %v1707_v5  }
 0x567   :  { %204 = vperm.xlu0 %1538, %v1707_v5  }
 0x569   :  { %1540 = vset.pattern.permute.xlu1 %v1659_v42 }
 0x56a   :  { %207 = vperm.xlu1 %1540, %v1712_v6  }
 0x56b   :  { %1541 = vset.pattern.permute.xlu0 %v1658_v41 }
 0x56c   :  { %219 = vperm.xlu0 %1541, %v1712_v6  }
 0x56e   :  { %1542 = vset.pattern.permute.xlu1 %v1660_v51 }
 0x56f   :  { %230 = vperm.xlu1 %1542, %v1707_v5  }
 0x570   :  { %1544 = vset.pattern.permute.xlu0 %v1660_v51 }
 0x571   :  { %233 = vperm.xlu0 %1544, %v1712_v6  }
 0x573   :  { %1543 = vset.pattern.permute.xlu1 %v1661_v52 }
 0x574   :  { %242 = vperm.xlu1 %1543, %v1707_v5  }
 0x575   :  { %1545 = vset.pattern.permute.xlu0 %v1661_v52 }
 0x578   :  { %245 = vperm.xlu1 %1543, %v1712_v6  }
 0x5d3   :  { %v571_v53 = vpop.permute.xlu1 %570 }
 0x5d4   :  { %v575_v54 = vmul.f32 %v1571_v35, %v571_v53 }
 0x5d5   :  { %v569_v55 = vpop.permute.xlu0 %568 }
 0x5d6   :  { %580 = vrot.lane.b32.xlu0 %v575_v54, %s1657_s19  ;;  %v574_v56 = vmul.f32 %v1573_v38, %v569_v55 }
 0x5d8   :  { %578 = vrot.lane.b32.xlu1 %v574_v56, %s1657_s19 }
 0x5e0   :  { %v217_v57 = vpop.permute.xlu1 %216 }
 0x5e1   :  { %vm221_vm12 = vcmp.eq.s32.totalorder %v1736_v12, %v217_v57 }
 0x5e2   :  { %v1323_v58 = vsel %vm221_vm12, 1.0, %v1649_v0  ;;  %v205_v59 = vpop.permute.xlu0 %204 }
 0x5e3   :  { %vm209_vm13 = vcmp.eq.s32.totalorder %v1736_v12, %v205_v59 }
 0x5e4   :  { %v1321_v5 = vsel %vm209_vm13, 1.0, %v1649_v0 }
 0x5e5   :  { %v208_v60 = vpop.permute.xlu1 %207  ;;  %v227_v6 = vadd.f32 %v1323_v58, %v1321_v5 }
 0x5e6   :  { %vm210_vm14 = vcmp.eq.s32.totalorder %v1736_v12, %v208_v60 }
 0x5e7   :  { %v1322_v61 = vsel %vm210_vm14, 1.0, %v1649_v0  ;;  %v220_v62 = vpop.permute.xlu0 %219  ;;  %1443 = vmatprep.mubr.msk.f32.mxu1 %vm259_vm4, %v227_v6 }
 0x5e8   :  { %vm222_vm15 = vcmp.eq.s32.totalorder %v1736_v12, %v220_v62 }
 0x5e9   :  { %v1324_v63 = vsel %vm222_vm15, 1.0, %v1649_v0 }
 0x5ea   :  { %v231_v1 = vpop.permute.xlu1 %230  ;;  %v228_v2 = vadd.f32 %v1324_v63, %v1322_v61 }
 0x5eb   :  { %vm235_vm0 = vcmp.eq.s32.totalorder %v1736_v12, %v231_v1 }
 0x5ec   :  { %1444 = vmatmul.mubr.msk.f32.gmra.mxu1 %vm259_vm4, %v228_v2  ;;  %v234_v3 = vpop.permute.xlu0 %233  ;;  %v1325_v4 = vsel %vm235_vm0, 1.0, %v1649_v0 }
 0x5ed   :  { %vm236_vm3 = vcmp.eq.s32.totalorder %v1736_v12, %v234_v3 }
 0x5ee   :  { %v1326_v13 = vsel %vm236_vm3, 1.0, %v1649_v0 }
 0x5ef   :  { %v243_v7 = vpop.permute.xlu1 %242 }
 0x5f0   :  { %vm247_vm2 = vcmp.eq.s32.totalorder %v1736_v12, %v243_v7 }
 0x5f1   :  { %v1327_v8 = vsel %vm247_vm2, 1.0, %v1649_v0 }
 0x5f2   :  { %v253_v9 = vadd.f32 %v1327_v8, %v1325_v4 }
 0x5f3   :  { %v246_v10 = vpop.permute.xlu1 %245 }
 0x5f4   :  { %vm248_vm5 = vcmp.eq.s32.totalorder %v1736_v12, %v246_v10  ;;  %1446 = vmatprep.mubr.msk.f32.mxu1 %vm259_vm4, %v253_v9 }
 0x5f5   :  { %v1328_v14 = vsel %vm248_vm5, 1.0, %v1649_v0 }
 0x5f6   :  { %v254_v15 = vadd.f32 %v1328_v14, %v1326_v13 }
 0x5f8   :  { %1447 = vmatmul.mubr.msk.f32.gmra.mxu1 %vm259_vm4, %v254_v15  ;;  %vm933_vm4 = vcmask 130048  }
 0x648   :  { %v581_v17 = vpop.permute.xlu0 %580 }
 0x64a   :  { %v579_v16 = vpop.permute.xlu1 %578 }
 0x64b   :  { %1464 = vmatprep.mubr.msk.f32.mxu1 %vm57_vm1, %v579_v16 }
 0x64c   :  { %1465 = vmatmul.mubr.msk.f32.vlgmr.msra.gmra.mxu1 %vm57_vm1, %v581_v17 }
 0x6ac   :  { %v1445_v18 = vpop.f32.mrf.mxu1 }
 0x6ad   :  { %v380_v22 = vadd.f32 %v1445_v18, %v1751_v29 }
 0x6ae   :  { %v374_v19 = vpop.f32.mrf.mxu1 }
 0x6af   :  { %v375_v23 = vadd.f32 %v1751_v29, %v374_v19  ;;  %v42_v19 = vld [vmem:[%s1934_s3 + $0x58] sm:$0xff] }
 0x6b0   :  { %1476 = vmatprep.subr.mxu1 %v42_v19 }
 0x6b1   :  { %1477 = vmatpush3.msra.mxu1 %v42_v19 }
 0x6b8   :  { %v1448_v20 = vpop.f32.mrf.mxu1 }
 0x6b9   :  { %v390_v55 = vadd.f32 %v1448_v20, %v1751_v29  ;;  %v39_v20 = vld [vmem:[%s1934_s3 + $0x40] sm:$0xff] }
 0x6ba   :  { %v384_v21 = vpop.f32.mrf.mxu1  ;;  %1485 = vmatprep.subr.mxu0 %v39_v20 }
 0x6bb   :  { %v385_v57 = vadd.f32 %v1751_v29, %v384_v21  ;;  %v41_v21 = vld [vmem:[%s1934_s3 + $0x50] sm:$0xff] }
 0x6bc   :  { %1478 = vmatprep.subr.mxu1 %v41_v21 }
 0x6bd   :  { %1479 = vmatpush3.msra.mxu1 %v41_v21 }
 0x70c   :  { %v1466_v12 = vpop.f32.mrf.mxu1 }
 0x70d   :  { %v662_v24 = vadd.f32 %v1466_v12, %v380_v22  ;;  %v38_v22 = vld [vmem:[%s1934_s3 + $0x38] sm:$0xff] }
 0x70e   :  { %v652_v0 = vpop.f32.mrf.mxu1 }
 0x70f   :  { %1578 = vtanh.f32 %v662_v24  ;;  %v661_v25 = vadd.f32 %v652_v0, %v375_v23  ;;  %v1348_v28 = vmul.f32 -1.442695, %v662_v24  ;;  %v846_v24 = vld [vmem:[#allocation2] sm:$0xff]  ;;  %v40_v0 = vld [vmem:[%s1934_s3 + $0x48] sm:$0xff] }
 0x710   :  { %1480 = vmatprep.subr.mxu1 %v40_v0 }
 0x711   :  { %1580 = vtanh.f32 %v661_v25  ;;  %v1347_v30 = vmul.f32 -1.442695, %v661_v25  ;;  %v847_v25 = vld [vmem:[#allocation2 + $0x8] sm:$0xff]  ;;  %1481 = vmatpush3.msra.mxu1 %v40_v0  ;;  %v1078_v0 = vshrl.u32 %v149_v11, 7 }
 0x712   :  { %1582 = vpow2.f32 %v1348_v28 }
 0x713   :  { %1584 = vpow2.f32 %v1347_v30 }
 0x71c   :  { %v1579_v26 = vpop.eup %1578 }
 0x71d   :  { %683 = vrot.lane.b32.xlu0 %v1579_v26, %s1653_s11 }
 0x71e   :  { %v1581_v27 = vpop.eup %1580 }
 0x71f   :  { %681 = vrot.lane.b32.xlu1 %v1581_v27, %s1653_s11  ;;  %v1583_v31 = vpop.eup %1582 }
 0x720   :  { %v1585_v32 = vpop.eup %1584  ;;  %v670_v33 = vadd.f32 1.0, %v1583_v31 }
 0x721   :  { %v669_v34 = vadd.f32 1.0, %v1585_v32 }
 0x722   :  { %1586 = vrcp.f32 %v670_v33 }
 0x723   :  { %1588 = vrcp.f32 %v669_v34  ;;  %v1357_v34 = vld [vmem:[%s1934_s3 + $0x60] ss:$0 sm:$0xff] }
 0x72f   :  { %v1587_v35 = vpop.eup %1586 }
 0x730   :  { %v1589_v38 = vpop.eup %1588  ;;  %v678_v41 = vmul.f32 %v1587_v35, %v1801_v45 }
 0x731   :  { %v677_v44 = vmul.f32 %v1589_v38, %v1805_v48 }
 0x78f   :  { %v684_v36 = vpop.permute.xlu0 %683 }
 0x790   :  { %v688_v37 = vmul.f32 %v1587_v35, %v684_v36 }
 0x791   :  { %v682_v39 = vpop.permute.xlu1 %681 }
 0x792   :  { %693 = vrot.lane.b32.xlu0 %v688_v37, %s1654_s12  ;;  %v687_v40 = vmul.f32 %v1589_v38, %v682_v39 }
 0x794   :  { %691 = vrot.lane.b32.xlu1 %v687_v40, %s1654_s12 }
 0x804   :  { %v694_v42 = vpop.permute.xlu0 %693 }
 0x805   :  { %v698_v43 = vadd.f32 %v694_v42, %v678_v41 }
 0x806   :  { %v692_v46 = vpop.permute.xlu1 %691 }
 0x807   :  { %1590 = vtanh.f32 %v698_v43  ;;  %v697_v47 = vadd.f32 %v692_v46, %v677_v44 }
 0x809   :  { %1592 = vtanh.f32 %v697_v47 }
 0x814   :  { %v1591_v49 = vpop.eup %1590 }
 0x815   :  { %705 = vrot.lane.b32.xlu0 %v1591_v49, %s1654_s12 }
 0x816   :  { %v1593_v50 = vpop.eup %1592 }
 0x817   :  { %703 = vrot.lane.b32.xlu1 %v1593_v50, %s1654_s12 }
 0x887   :  { %v706_v51 = vpop.permute.xlu0 %705 }
 0x888   :  { %v710_v52 = vmul.f32 %v1587_v35, %v706_v51 }
 0x889   :  { %v704_v53 = vpop.permute.xlu1 %703 }
 0x88a   :  { %715 = vrot.lane.b32.xlu0 %v710_v52, %s1657_s19  ;;  %v709_v45 = vmul.f32 %v1589_v38, %v704_v53 }
 0x88c   :  { %713 = vrot.lane.b32.xlu1 %v709_v45, %s1657_s19 }
 0x8fc   :  { %v716_v48 = vpop.permute.xlu0 %715 }
 0x8fe   :  { %v714_v54 = vpop.permute.xlu1 %713 }
 0x8ff   :  { %1473 = vmatprep.mubr.msk.f32.mxu0 %vm57_vm1, %v714_v54 }
 0x900   :  { %1474 = vmatmul.mubr.msk.f32.vlgmr.msra.gmra.mxu0 %vm57_vm1, %v716_v48 }
 0x901   :  { %1486 = vmatpush3.msra.mxu0 %v39_v20  ;;  %1489 = vmatprep.mubr.msk.f32.mxu0 %vm933_vm4, %v846_v24 }
 0x902   :  { %1487 = vmatprep.subr.mxu0 %v38_v22 }
 0x903   :  { %1488 = vmatpush3.msra.mxu0 %v38_v22 }
 0x904   :  { %1490 = vmatmul.mubr.msk.f32.vlgmr.msra.gmra.mxu0 %vm933_vm4, %v847_v25  ;;  %v1079_v25 = vsub.s32 0, %v1078_v0 }
 0x9c0   :  { %v1475_v56 = vpop.f32.mrf.mxu0 }
 0x9c1   :  { %v797_v58 = vadd.f32 %v1475_v56, %v390_v55 }
 0x9c2   :  { %v787_v59 = vpop.f32.mrf.mxu0 }
 0x9c3   :  { %1594 = vtanh.f32 %v797_v58  ;;  %v796_v5 = vadd.f32 %v787_v59, %v385_v57  ;;  %v1352_v61 = vmul.f32 -1.442695, %v797_v58 }
 0x9c4   :  { %v1491_v33 = vpop.f32.mrf.mxu0 }
 0x9c5   :  { %1596 = vtanh.f32 %v796_v5  ;;  %v1351_v62 = vmul.f32 -1.442695, %v796_v5 }
 0x9c6   :  { %1598 = vpow2.f32 %v1352_v61  ;;  %v1006_v37 = vpop.f32.mrf.mxu0 }
 0x9c7   :  { %1600 = vpow2.f32 %v1351_v62 }
 0x9d0   :  { %v1595_v60 = vpop.eup %1594 }
 0x9d1   :  { %818 = vrot.lane.b32.xlu0 %v1595_v60, %s1653_s11 }
 0x9d2   :  { %v1597_v6 = vpop.eup %1596 }
 0x9d3   :  { %816 = vrot.lane.b32.xlu1 %v1597_v6, %s1653_s11  ;;  %v1599_v63 = vpop.eup %1598 }
 0x9d4   :  { %v1601_v1 = vpop.eup %1600  ;;  %v805_v2 = vadd.f32 1.0, %v1599_v63 }
 0x9d5   :  { %v804_v3 = vadd.f32 1.0, %v1601_v1 }
 0x9d6   :  { %1602 = vrcp.f32 %v805_v2 }
 0x9d7   :  { %1604 = vrcp.f32 %v804_v3 }
 0x9e3   :  { %v1603_v29 = vpop.eup %1602 }
 0x9e4   :  { %v1605_v8 = vpop.eup %1604  ;;  %v813_v13 = vmul.f32 %v1603_v29, %v698_v43 }
 0x9e5   :  { %v812_v16 = vmul.f32 %v1605_v8, %v697_v47 }
 0xa43   :  { %v819_v4 = vpop.permute.xlu0 %818 }
 0xa44   :  { %v823_v7 = vmul.f32 %v1603_v29, %v819_v4 }
 0xa45   :  { %v817_v9 = vpop.permute.xlu1 %816 }
 0xa46   :  { %828 = vrot.lane.b32.xlu0 %v823_v7, %s1654_s12  ;;  %v822_v10 = vmul.f32 %v1605_v8, %v817_v9 }
 0xa48   :  { %826 = vrot.lane.b32.xlu1 %v822_v10, %s1654_s12 }
 0xab8   :  { %v829_v14 = vpop.permute.xlu0 %828 }
 0xab9   :  { %v833_v15 = vadd.f32 %v829_v14, %v813_v13  ;;  %v49_v14 = vld [vmem:[%s1934_s3 + $0x88] sm:$0xff] }
 0xaba   :  { %v827_v17 = vpop.permute.xlu1 %826  ;;  %1492 = vmatprep.subr.mxu0 %v49_v14 }
 0xabb   :  { %1606 = vtanh.f32 %v833_v15  ;;  %v832_v18 = vadd.f32 %v827_v17, %v812_v16  ;;  %v48_v15 = vld [vmem:[%s1934_s3 + $0x80] sm:$0xff]  ;;  %1493 = vmatpush3.msra.mxu0 %v49_v14  ;;  %v47_v16 = vld [vmem:[%s1934_s3 + $0x78] sm:$0xff]  ;;  %v46_v17 = vld [vmem:[%s1934_s3 + $0x70] sm:$0xff] }
 0xabc   :  { %1494 = vmatprep.subr.mxu0 %v48_v15 }
 0xabd   :  { %1608 = vtanh.f32 %v832_v18  ;;  %1495 = vmatpush3.msra.mxu0 %v48_v15  ;;  %v44_v18 = vld [vmem:[%s1934_s3 + $0x68] sm:$0xff] }
 0xabe   :  { %1496 = vmatprep.subr.mxu0 %v47_v16  ;;  %v1095_v22 = vadd.f32 1e-05, %v44_v18 }
 0xabf   :  { %1497 = vmatpush3.msra.mxu0 %v47_v16 }
 0xac0   :  { %1498 = vmatprep.subr.mxu0 %v46_v17 }
 0xac1   :  { %1499 = vmatpush3.msra.mxu0 %v46_v17 }
 0xac8   :  { %v1607_v12 = vpop.eup %1606 }
 0xac9   :  { %840 = vrot.lane.b32.xlu0 %v1607_v12, %s1654_s12 }
 0xaca   :  { %v1609_v23 = vpop.eup %1608 }
 0xacb   :  { %838 = vrot.lane.b32.xlu1 %v1609_v23, %s1654_s12 }
 0xb3b   :  { %v841_v26 = vpop.permute.xlu0 %840 }
 0xb3c   :  { %v845_v27 = vmul.f32 %v1603_v29, %v841_v26  ;;  %v1085_v26 = vsub.s32 1, %v1078_v0 }
 0xb3d   :  { %v839_v28 = vpop.permute.xlu1 %838 }
 0xb3e   :  { %852 = vrot.lane.b32.xlu0 %v845_v27, %s1657_s19  ;;  %v844_v30 = vmul.f32 %v1605_v8, %v839_v28  ;;  %v1080_v27 = vrot.slane %v44_v18, %v1079_v25  ;;  %v1091_v28 = vsub.s32 4, %v1078_v0 }
 0xb40   :  { %850 = vrot.lane.b32.xlu1 %v844_v30, %s1657_s19 }
 0xbb0   :  { %v853_v32 = vpop.permute.xlu0 %852 }
 0xbb2   :  { %v851_v31 = vpop.permute.xlu1 %850 }
 0xbb3   :  { %1482 = vmatprep.mubr.msk.f32.mxu1 %vm57_vm1, %v851_v31 }
 0xbb4   :  { %1483 = vmatmul.mubr.msk.f32.vlgmr.msra.gmra.mxu1 %vm57_vm1, %v853_v32  ;;  %vm1049_vm1 = vcmask 261120  }
 0xc74   :  { %v1484_v35 = vpop.f32.mrf.mxu1 }
 0xc75   :  { %v1012_v36 = vadd.f32 %v1491_v33, %v1484_v35  ;;  %v1086_v33 = vrot.slane %v44_v18, %v1085_v26 }
 0xc76   :  { %v924_v38 = vpop.f32.mrf.mxu1 }
 0xc77   :  { %v1020_v39 = vadd.f32 %v1357_v34, %v1012_v36  ;;  %v1007_v40 = vadd.f32 %v1006_v37, %v924_v38  ;;  %v1092_v38 = vrot.slane %v44_v18, %v1091_v28 }
 0xc79   :  { %v1024_v41 = vmul.f32 0.044715, %v1020_v39  ;;  %v1019_v42 = vadd.f32 %v1357_v34, %v1007_v40  ;;  %v1022_v54 = vmul.f32 0.5, %v1020_v39  ;;  %v1099_v34 = vsub.s32 5, %v1078_v0 }
 0xc7b   :  { %v1023_v43 = vmul.f32 0.044715, %v1019_v42  ;;  %v1026_v44 = vmul.f32 %v1024_v41, %v1020_v39  ;;  %v1021_v57 = vmul.f32 0.5, %v1019_v42 }
 0xc7d   :  { %v1028_v46 = vmul.f32 %v1026_v44, %v1020_v39  ;;  %v1025_v47 = vmul.f32 %v1023_v43, %v1019_v42 }
 0xc7f   :  { %v1030_v49 = vadd.f32 %v1028_v46, %v1020_v39  ;;  %v1027_v50 = vmul.f32 %v1025_v47, %v1019_v42  ;;  %v1105_v39 = vsub.s32 2, %v1078_v0  ;;  %v1111_v46 = vsub.s32 3, %v1078_v0 }
 0xc81   :  { %v1032_v51 = vmul.f32 0.7978846, %v1030_v49  ;;  %v1029_v52 = vadd.f32 %v1027_v50, %v1019_v42  ;;  %v1106_v11 = vrot.slane %v44_v18, %v1105_v39 }
 0xc83   :  { %1610 = vtanh.f32 %v1032_v51  ;;  %v1031_v53 = vmul.f32 0.7978846, %v1029_v52  ;;  %v1112_v52 = vrot.slane %v44_v18, %v1111_v46 }
 0xc85   :  { %1612 = vtanh.f32 %v1031_v53 }
 0xc90   :  { %v1611_v45 = vpop.eup %1610 }
 0xc91   :  { %v1036_v48 = vadd.f32 1.0, %v1611_v45 }
 0xc92   :  { %v1613_v55 = vpop.eup %1612 }
 0xc93   :  { %v1038_v56 = vmul.f32 %v1036_v48, %v1022_v54  ;;  %v1035_v58 = vadd.f32 1.0, %v1613_v55  ;;  %v53_v48 = vld [vmem:[%s1934_s3 + $0xa8] sm:$0xff]  ;;  %v52_v55 = vld [vmem:[%s1934_s3 + $0xa0] sm:$0xff] }
 0xc94   :  { %1503 = vmatprep.subr.mxu1 %v53_v48 }
 0xc95   :  { %1043 = vrot.lane.b32.xlu0 %v1038_v56, %s1662_s5  ;;  %v1037_v59 = vmul.f32 %v1035_v58, %v1021_v57  ;;  %1504 = vmatpush3.msra.mxu1 %v53_v48  ;;  %v50_v57 = vld [vmem:[%s1934_s3 + $0x90] sm:$0xff]  ;;  %v1117_v58 = vsub.s32 6, %v1078_v0 }
 0xc96   :  { %1505 = vmatprep.subr.mxu1 %v52_v55 }
 0xc97   :  { %1041 = vrot.lane.b32.xlu1 %v1037_v59, %s1662_s5  ;;  %1506 = vmatpush3.msra.mxu1 %v52_v55 }
 0xd07   :  { %v1044_v5 = vpop.permute.xlu0 %1043 }
 0xd08   :  { %v1048_v60 = vadd.f32 %v1044_v5, %v1038_v56  ;;  %v51_v56 = vld [vmem:[%s1934_s3 + $0x98] sm:$0xff] }
 0xd09   :  { %v1042_v6 = vpop.permute.xlu1 %1041  ;;  %1507 = vmatprep.subr.mxu1 %v51_v56 }
 0xd0a   :  { %v1047_v61 = vadd.f32 %v1042_v6, %v1037_v59  ;;  %v1053_v62 = vsel %vm1049_vm1, %v1048_v60, 0.0  ;;  %1508 = vmatpush3.msra.mxu1 %v51_v56  ;;  %v1118_v59 = vrot.slane %v44_v18, %v1117_v58 }
 0xd0b   :  { %1054 = vadd.xlane.f32.xlu0 %v1053_v62  ;;  %1509 = vmatprep.subr.mxu1 %v50_v57 }
 0xd0c   :  { %v1050_v63 = vsel %vm1049_vm1, %v1047_v61, 0.0  ;;  %1510 = vmatpush3.msra.mxu1 %v50_v57 }
 0xd0d   :  { %1051 = vadd.xlane.f32.xlu1 %v1050_v63 }
 0xd94   :  { %v1055_v1 = vpop.xlane.xlu0 %1054 }
 0xd95   :  { %v1058_v2 = vmul.f32 0.03125, %v1055_v1 }
 0xd96   :  { %v1052_v3 = vpop.xlane.xlu1 %1051 }
 0xd97   :  { %v1060_v29 = vsub.f32 %v1048_v60, %v1058_v2  ;;  %v1057_v4 = vmul.f32 0.03125, %v1052_v3 }
 0xd99   :  { %v1059_v7 = vsub.f32 %v1047_v61, %v1057_v4  ;;  %v1062_v8 = vmul.f32 %v1060_v29, %v1060_v29 }
 0xd9b   :  { %v1066_v9 = vsel %vm1049_vm1, %v1062_v8, 0.0  ;;  %v1061_v10 = vmul.f32 %v1059_v7, %v1059_v7 }
 0xd9c   :  { %1067 = vadd.xlane.f32.xlu1 %v1066_v9 }
 0xd9d   :  { %v1063_v13 = vsel %vm1049_vm1, %v1061_v10, 0.0 }
 0xd9e   :  { %1064 = vadd.xlane.f32.xlu0 %v1063_v13 }
 0xe25   :  { %v1068_v19 = vpop.xlane.xlu1 %1067 }
 0xe26   :  { %v1070_v20 = vmul.f32 0.03125, %v1068_v19 }
 0xe27   :  { %v1065_v21 = vpop.xlane.xlu0 %1064 }
 0xe28   :  { %v1072_v12 = vadd.f32 1e-05, %v1070_v20  ;;  %v1069_v23 = vmul.f32 0.03125, %v1065_v21  ;;  %v1360_v20 = vld [vmem:[%s1934_s3 + $0x6f] ss:$0 sm:$0xff] }
 0xe2a   :  { %1614 = vrsqrt.f32 %v1072_v12  ;;  %v1071_v24 = vadd.f32 1e-05, %v1069_v23 }
 0xe2b   :  { %1616 = vrsqrt.f32 %v1095_v22 }
 0xe2c   :  { %1618 = vrsqrt.f32 %v1071_v24 }
 0xe37   :  { %v1615_v30 = vpop.eup %1614 }
 0xe38   :  { %v1617_v31 = vpop.eup %1616  ;;  %v1076_v32 = vmul.f32 %v1615_v30, %v1060_v29 }
 0xe39   :  { %v1619_v35 = vpop.eup %1618  ;;  %v1100_v42 = vrot.slane %v1617_v31, %v1099_v34 }
 0xe3a   :  { %v1082_v36 = vmul.f32 %v1080_v27, %v1076_v32  ;;  %v1075_v37 = vmul.f32 %v1619_v35, %v1059_v7 }
 0xe3c   :  { %v1081_v40 = vmul.f32 %v1080_v27, %v1075_v37  ;;  %v1088_v41 = vadd.f32 %v1086_v33, %v1082_v36 }
 0xe3e   :  { %v1087_v43 = vadd.f32 %v1086_v33, %v1081_v40  ;;  %v1094_v44 = vsub.f32 %v1088_v41, %v1092_v38 }
 0xe40   :  { %v1093_v47 = vsub.f32 %v1087_v43, %v1092_v38  ;;  %v1102_v49 = vmul.f32 %v1100_v42, %v1094_v44 }
 0xe42   :  { %v1101_v50 = vmul.f32 %v1100_v42, %v1093_v47  ;;  %v1108_v51 = vmul.f32 %v1106_v11, %v1102_v49 }
 0xe44   :  { %v1107_v53 = vmul.f32 %v1106_v11, %v1101_v50  ;;  %v1114_v54 = vadd.f32 %v1112_v52, %v1108_v51 }
 0xe46   :  { %v1113_v45 = vadd.f32 %v1112_v52, %v1107_v53 }
 0xe48   :  { %1500 = vmatprep.mubr.msk.f32.mxu0 %vm1049_vm1, %v1113_v45 }
 0xe49   :  { %1501 = vmatmul.mubr.msk.f32.vlgmr.msra.gmra.mxu0 %vm1049_vm1, %v1114_v54 }
 0xf09   :  { %v1502_v5 = vpop.f32.mrf.mxu0 }
 0xf0a   :  { %v1197_v60 = vadd.f32 %v1502_v5, %v1118_v59 }
 0xf0b   :  { %v1191_v6 = vpop.f32.mrf.mxu0 }
 0xf0c   :  { %v1203_v61 = vmul.f32 0.044715, %v1197_v60  ;;  %v1192_v62 = vadd.f32 %v1191_v6, %v1118_v59  ;;  %v1201_v17 = vmul.f32 0.5, %v1197_v60 }
 0xf0e   :  { %v1205_v63 = vmul.f32 %v1203_v61, %v1197_v60  ;;  %v1202_v1 = vmul.f32 0.044715, %v1192_v62  ;;  %v1200_v15 = vmul.f32 0.5, %v1192_v62 }
 0xf10   :  { %v1207_v2 = vmul.f32 %v1205_v63, %v1197_v60  ;;  %v1204_v3 = vmul.f32 %v1202_v1, %v1192_v62 }
 0xf12   :  { %v1209_v29 = vadd.f32 %v1207_v2, %v1197_v60  ;;  %v1206_v4 = vmul.f32 %v1204_v3, %v1192_v62 }
 0xf14   :  { %v1211_v7 = vmul.f32 0.7978846, %v1209_v29  ;;  %v1208_v8 = vadd.f32 %v1206_v4, %v1192_v62 }
 0xf16   :  { %1620 = vtanh.f32 %v1211_v7  ;;  %v1210_v9 = vmul.f32 0.7978846, %v1208_v8 }
 0xf18   :  { %1622 = vtanh.f32 %v1210_v9 }
 0xf23   :  { %v1621_v10 = vpop.eup %1620 }
 0xf24   :  { %v1215_v14 = vadd.f32 1.0, %v1621_v10 }
 0xf25   :  { %v1623_v13 = vpop.eup %1622 }
 0xf26   :  { %v1214_v16 = vadd.f32 1.0, %v1623_v13  ;;  %v1217_v19 = vmul.f32 %v1215_v14, %v1201_v17 }
 0xf28   :  { %v1216_v18 = vmul.f32 %v1214_v16, %v1200_v15 }
 0xf2a   :  { %1511 = vmatprep.mubr.msk.f32.mxu1 %vm1049_vm1, %v1216_v18 }
 0xf2b   :  { %1512 = vmatmul.mubr.msk.f32.vlgmr.msra.gmra.mxu1 %vm1049_vm1, %v1217_v19 }
 0xfeb   :  { %v1513_v21 = vpop.f32.mrf.mxu1 }
 0xfec   :  { %v1300_v22 = vadd.f32 %v1513_v21, %v1360_v20 }
 0xfed   :  { %v1294_v12 = vpop.f32.mrf.mxu1 }
 0xfee   :  { %1304 = vst [vmem:[%s1935_s4 + $0x8] sm:$0xff] %v1300_v22  ;;  %v1295_v23 = vadd.f32 %v1360_v20, %v1294_v12 }
 0xff0   :  { %1303 = vst [vmem:[%s1935_s4] sm:$0xff] %v1295_v23 }
 0xff1   :  { %1309 = vsyncpa [#allocation3], 1 }

</bundles_post_ra>
